<compile_context>
chip_gen: v7x
topology: tpu7x:2x2x1
jax: 0.10.0
libtpu: 0.0.40
codegen_flags: <defaults>
</compile_context>

<pallas_src>
import functools

import numpy as np
import jax
import jax.numpy as jnp
from jax.experimental import pallas as pl
from jax.experimental.pallas import tpu as pltpu

LN_EPS = 1e-5


def _pick_token_tile(n: int, cap: int = 512) -> int:
    """Lane (token) tile: full dim for small N (lane-masked stores); otherwise
    the largest multiple of 128 <= cap, preferring one that divides N evenly
    so the last tile is not ragged."""
    if n <= 128:
        return n
    cap = max(128, min((cap // 128) * 128, ((n + 127) // 128) * 128))
    for cand in range(cap, 127, -128):
        if n % cand == 0:
            return cand
    return cap  # ragged tail: Pallas masks the out-of-range tail writes


def _rev_proj_kernel(x_ref, pinv_t_ref, gamma_ref, beta_ref, o_ref, *, inv_w):
    # x_ref:      (D, tn)  native (B, D, N) slice — no host-side transpose
    # pinv_t_ref: (W, D)   bf16 pinverse(proj)^T, resident across the grid
    # gamma_ref:  (W, 1)   f32 ln_post.weight
    # beta_ref:   (W, 1)   f32 ln_post.bias
    # o_ref:      (W, tn)  written straight into the (B, W, N) output
    x = x_ref[...].astype(pinv_t_ref.dtype)                  # bf16 MXU fast path
    h = jnp.dot(pinv_t_ref[...], x,
                preferred_element_type=jnp.float32)           # (W, tn) f32
    # LayerNorm over W (sublane axis), independently per token column.
    # Two-pass (centered) variance for numerical robustness.
    mean = jnp.sum(h, axis=0, keepdims=True) * inv_w           # (1, tn)
    c = h - mean
    var = jnp.sum(c * c, axis=0, keepdims=True) * inv_w        # (1, tn)
    hn = c * jax.lax.rsqrt(var + LN_EPS)
    o_ref[...] = (hn * gamma_ref[...] + beta_ref[...]).astype(o_ref.dtype)


def make_reverse_projection(proj, ln_gamma, ln_beta, *,
                            compute_dtype=jnp.bfloat16, token_tile=512):
    """Factory: hoist pinverse(proj) out of the per-call path.

    proj:     (W, D)  CLIP visual.proj
    ln_gamma: (W,)    ln_post.weight
    ln_beta:  (W,)    ln_post.bias
    forward(text_token: (B, D, N)) -> (B, W, N)
    """
    W, D = proj.shape

    # TODO(synk): torch.pinverse (SVD) has no in-kernel equivalent; it is a
    # one-time parameter transform, so it is computed on the host here.
    pinv_t = np.linalg.pinv(np.asarray(proj, dtype=np.float32)).T     # (W, D)
    pinv_t = jnp.asarray(pinv_t, dtype=compute_dtype)
    gamma = jnp.asarray(ln_gamma, jnp.float32).reshape(W, 1)
    beta = jnp.asarray(ln_beta, jnp.float32).reshape(W, 1)

    kernel = functools.partial(_rev_proj_kernel, inv_w=1.0 / float(W))

    @jax.jit
    def forward(text_token):
        B, D_in, N = text_token.shape
        assert D_in == D, "text_token feature dim must match proj"
        out_dtype = text_token.dtype

        tn = _pick_token_tile(N, token_tile)
        grid = (B, pl.cdiv(N, tn))

        x_bytes = jnp.dtype(text_token.dtype).itemsize
        o_bytes = jnp.dtype(out_dtype).itemsize
        p_bytes = jnp.dtype(compute_dtype).itemsize
        # double-buffered streaming blocks + resident weights + f32 scratch
        vmem_need = (2 * tn * (D * x_bytes + W * o_bytes)
                     + 2 * (W * D * p_bytes + 2 * W * 4)
                     + 2 * W * tn * 4)
        vmem_limit = None
        if vmem_need > (24 << 20):
            # keep within v7x's 64 MiB physical VMEM
            vmem_limit = min(int(vmem_need) + (8 << 20), 64 << 20)

        return pl.pallas_call(
            kernel,
            out_shape=jax.ShapeDtypeStruct((B, W, N), out_dtype),
            grid_spec=pltpu.PrefetchScalarGridSpec(
                num_scalar_prefetch=0,
                grid=grid,
                in_specs=[
                    # native-layout token tile of the input, batch dim squeezed
                    pl.BlockSpec((pl.Squeezed(), D, tn), lambda b, j: (b, 0, j)),
                    # resident operands (constant index map -> no per-step DMA)
                    pl.BlockSpec((W, D), lambda b, j: (0, 0)),
                    pl.BlockSpec((W, 1), lambda b, j: (0, 0)),
                    pl.BlockSpec((W, 1), lambda b, j: (0, 0)),
                ],
                out_specs=pl.BlockSpec((pl.Squeezed(), W, tn),
                                       lambda b, j: (b, 0, j)),
            ),
            compiler_params=pltpu.CompilerParams(
                dimension_semantics=("parallel", "parallel"),
                vmem_limit_bytes=vmem_limit),
            cost_estimate=pl.CostEstimate(
                flops=2 * B * N * D * W,
                bytes_accessed=(B * D * N * x_bytes
                                + W * D * p_bytes + 2 * W * 4
                                + B * W * N * o_bytes),
                transcendentals=B * N),
        )(text_token, pinv_t, gamma, beta)

    return forward


def _reference(text_token, proj, ln_gamma, ln_beta):
    pinv = jnp.asarray(np.linalg.pinv(np.asarray(proj, np.float32)))
    x = jnp.transpose(text_token, (0, 2, 1)).astype(jnp.float32) @ pinv
    mean = jnp.mean(x, axis=-1, keepdims=True)
    var = jnp.mean((x - mean) ** 2, axis=-1, keepdims=True)
    xn = (x - mean) / jnp.sqrt(var + LN_EPS)
    y = xn * ln_gamma + ln_beta
    return jnp.transpose(y, (0, 2, 1))


if __name__ == "__main__":
    # Small shapes consistent with the forward:
    #   B=2 batches, D=32 (embed dim), N=8 tokens, W=64 (visual width).
    B, D, N, W = 2, 32, 8, 64

    key = jax.random.PRNGKey(0)
    k_x, k_proj = jax.random.split(key, 2)

    text_token = jax.random.normal(k_x, (B, D, N), dtype=jnp.float32)
    proj = jax.random.normal(k_proj, (W, D), dtype=jnp.float32) * (W ** -0.5)
    ln_gamma = jnp.ones((W,), dtype=jnp.float32)
    ln_beta = jnp.zeros((W,), dtype=jnp.float32)

    reverse_projection = make_reverse_projection(proj, ln_gamma, ln_beta)

    out = jax.block_until_ready(reverse_projection(text_token))

    ref = _reference(text_token, proj, ln_gamma, ln_beta)
    assert out.shape == (B, W, N), out.shape
    # Kernel intentionally uses bf16 pinv / bf16 x-cast (f32 accumulation),
    # reference is pure f32 — hence the loosened tolerance.
    assert jnp.allclose(out, ref, atol=5e-2, rtol=5e-2), "mismatch vs reference"

    print("KERNEL_OK")
</pallas_src>

<mosaic_0001>
module attributes {stable_mosaic.version = 11 : i64} {
  func.func @_rev_proj_kernel(%arg0: i32, %arg1: i32, %arg2: memref<1x32x8xf32, #tpu.memory_space<vmem>>, %arg3: memref<64x32xbf16, #tpu.memory_space<vmem>>, %arg4: memref<64x1xf32, #tpu.memory_space<vmem>>, %arg5: memref<64x1xf32, #tpu.memory_space<vmem>>, %arg6: memref<1x64x8xf32, #tpu.memory_space<vmem>>) attributes {dimension_semantics = [#tpu.dimension_semantics<parallel>, #tpu.dimension_semantics<parallel>], iteration_bounds = array<i64: 2, 1>, scalar_prefetch = 0 : i64, scratch_operands = 0 : i64, tpu.core_type = #tpu.core_type<tc>, window_params = [{transform_indices = @transform_0, window_bounds = array<i64: 1, 32, 8>}, {pipeline_mode = #tpu.pipeline_mode<synchronous>, transform_indices = @transform_1, window_bounds = array<i64: 64, 32>}, {pipeline_mode = #tpu.pipeline_mode<synchronous>, transform_indices = @transform_2, window_bounds = array<i64: 64, 1>}, {pipeline_mode = #tpu.pipeline_mode<synchronous>, transform_indices = @transform_3, window_bounds = array<i64: 64, 1>}, {transform_indices = @transform_4, window_bounds = array<i64: 1, 64, 8>}]} {
    %c0 = arith.constant 0 : index
    %c0_0 = arith.constant 0 : index
    %c0_1 = arith.constant 0 : index
    %0 = vector.load %arg2[%c0, %c0_0, %c0_1] : memref<1x32x8xf32, #tpu.memory_space<vmem>>, vector<1x32x8xf32>
    %1 = vector.shape_cast %0 : vector<1x32x8xf32> to vector<32x8xf32>
    %2 = arith.truncf %1 : vector<32x8xf32> to vector<32x8xbf16>
    %c0_2 = arith.constant 0 : index
    %c0_3 = arith.constant 0 : index
    %3 = vector.load %arg3[%c0_2, %c0_3] : memref<64x32xbf16, #tpu.memory_space<vmem>>, vector<64x32xbf16>
    %cst = arith.constant dense<0.000000e+00> : vector<64x8xf32>
    %4 = tpu.matmul %3, %2, %cst {dimension_numbers = #tpu.dot_dimension_numbers<[1], [0], [0], [1], [0, 0, 1, 1], [], []>} : vector<64x32xbf16>, vector<32x8xbf16>, vector<64x8xf32> -> vector<64x8xf32>
    %cst_4 = arith.constant dense<0.000000e+00> : vector<8xf32>
    %5 = vector.multi_reduction <add>, %4, %cst_4 [0] : vector<64x8xf32> to vector<8xf32>
    %6 = vector.shape_cast %5 : vector<8xf32> to vector<1x8xf32>
    %cst_5 = arith.constant 1.562500e-02 : f32
    %7 = vector.broadcast %cst_5 : f32 to vector<1x8xf32>
    %8 = arith.mulf %6, %7 : vector<1x8xf32>
    %9 = vector.broadcast %8 : vector<1x8xf32> to vector<64x8xf32>
    %10 = arith.subf %4, %9 : vector<64x8xf32>
    %11 = arith.mulf %10, %10 : vector<64x8xf32>
    %cst_6 = arith.constant dense<0.000000e+00> : vector<8xf32>
    %12 = vector.multi_reduction <add>, %11, %cst_6 [0] : vector<64x8xf32> to vector<8xf32>
    %13 = vector.shape_cast %12 : vector<8xf32> to vector<1x8xf32>
    %cst_7 = arith.constant 1.562500e-02 : f32
    %14 = vector.broadcast %cst_7 : f32 to vector<1x8xf32>
    %15 = arith.mulf %13, %14 : vector<1x8xf32>
    %cst_8 = arith.constant 9.99999974E-6 : f32
    %16 = vector.broadcast %cst_8 : f32 to vector<1x8xf32>
    %17 = arith.addf %15, %16 : vector<1x8xf32>
    %18 = math.rsqrt %17 : vector<1x8xf32>
    %19 = vector.broadcast %18 : vector<1x8xf32> to vector<64x8xf32>
    %20 = arith.mulf %10, %19 : vector<64x8xf32>
    %c0_9 = arith.constant 0 : index
    %c0_10 = arith.constant 0 : index
    %21 = vector.load %arg4[%c0_9, %c0_10] : memref<64x1xf32, #tpu.memory_space<vmem>>, vector<64x1xf32>
    %22 = vector.broadcast %21 : vector<64x1xf32> to vector<64x8xf32>
    %23 = arith.mulf %20, %22 : vector<64x8xf32>
    %c0_11 = arith.constant 0 : index
    %c0_12 = arith.constant 0 : index
    %24 = vector.load %arg5[%c0_11, %c0_12] : memref<64x1xf32, #tpu.memory_space<vmem>>, vector<64x1xf32>
    %25 = vector.broadcast %24 : vector<64x1xf32> to vector<64x8xf32>
    %26 = arith.addf %23, %25 : vector<64x8xf32>
    %c0_13 = arith.constant 0 : index
    %c0_14 = arith.constant 0 : index
    %c0_15 = arith.constant 0 : index
    %27 = vector.load %arg6[%c0_13, %c0_14, %c0_15] : memref<1x64x8xf32, #tpu.memory_space<vmem>>, vector<1x64x8xf32>
    %28 = vector.shape_cast %27 : vector<1x64x8xf32> to vector<64x8xf32>
    %29 = vector.shape_cast %26 : vector<64x8xf32> to vector<1x64x8xf32>
    tpu.vector_store %arg6[%c0_13, %c0_14, %c0_15], %29 {strides = array<i32>} : memref<1x64x8xf32, #tpu.memory_space<vmem>>, vector<1x64x8xf32>,
    return
  }
  func.func @transform_0(%arg0: i32, %arg1: i32) -> (i32, i32, i32) {
    %c0_i32 = arith.constant 0 : i32
    %c0_i32_0 = arith.constant 0 : i32
    return %arg0, %c0_i32, %arg1 : i32, i32, i32
  }
  func.func @transform_1(%arg0: i32, %arg1: i32) -> (i32, i32) {
    %c0_i32 = arith.constant 0 : i32
    %c0_i32_0 = arith.constant 0 : i32
    %c0_i32_1 = arith.constant 0 : i32
    return %c0_i32, %c0_i32_0 : i32, i32
  }
  func.func @transform_2(%arg0: i32, %arg1: i32) -> (i32, i32) {
    %c0_i32 = arith.constant 0 : i32
    %c0_i32_0 = arith.constant 0 : i32
    %c0_i32_1 = arith.constant 0 : i32
    return %c0_i32, %c0_i32_0 : i32, i32
  }
  func.func @transform_3(%arg0: i32, %arg1: i32) -> (i32, i32) {
    %c0_i32 = arith.constant 0 : i32
    %c0_i32_0 = arith.constant 0 : i32
    %c0_i32_1 = arith.constant 0 : i32
    return %c0_i32, %c0_i32_0 : i32, i32
  }
  func.func @transform_4(%arg0: i32, %arg1: i32) -> (i32, i32, i32) {
    %c0_i32 = arith.constant 0 : i32
    %c0_i32_0 = arith.constant 0 : i32
    return %arg0, %c0_i32, %arg1 : i32, i32, i32
  }
}

</mosaic_0001>

<bundles_post_ra>
// kernel: forward.1
= control target key start
LH: loop header
LB: loop body
LE: loop exit
PB: predicated region body
PF: predicated region fallthrough
CT: control target
= control target key end

     0   :  { %s742_s15 = smov 0   ;;  %s744_s16 = smov 0   ;;  %s867_s0 = inlined_call_operand.vmem [shape: f32[2,32,8], index: 0, kind: input, shape index: {}]   ;;  %s868_s1 = inlined_call_operand.vmem [shape: bf16[64,32], index: 1, kind: input, shape index: {}]   ;;  %s869_s2 = inlined_call_operand.vmem [shape: f32[64,1], index: 2, kind: input, shape index: {}]   ;;  %s870_s3 = inlined_call_operand.vmem [shape: f32[64,1], index: 3, kind: input, shape index: {}]   ;;  %s871_s4 = inlined_call_operand.vmem [shape: f32[2,64,8], index: 4, kind: output, shape index: {}]  }
   0x1   :  { %s746_s17 = smov 0  }
   0x2 LB: > { %s26_s18 = sadd.s32 1, %s710_s16  ;;  %p620_p0 = scmp.ge.s32.totalorder %s714_s17, 1  ;;  %s714_s17 = sphi %s746_s17, %s14_s17   ;;  %s710_s16 = sphi %s744_s16, %s873_s16   ;;  %s706_s15 = sphi %s742_s15, %s872_s15  }
   0x3   : > { %p28_p1 = scmp.ge.s32.totalorder %s26_s18, 2  ;;  %p181_p2 = scmp.lt.s32.totalorder %s714_s17, 3 }
   0x5   : > { %s875_s18 = smov (%p28_p1, %s26_s18), 0  ;;  %p182_p3 = pnand %p620_p0, %p181_p2 }
   0x6   : > { %p213_p4 = scmp.lt.s32.totalorder (!%p182_p3), %s706_s15, 1  ;;  %v686_v0 = vld [vmem:[%s868_s1] sm:$0xff] (!%p182_p3)   ;;  %vm264_vm0 = vcmask (!%p182_p3), 261120   ;;  %v688_v1 = vld [vmem:[%s868_s1 + $0x10] sm:$0xff] (!%p182_p3)   ;;  %v716_v2 = vmov (!%p182_p3), 0   ;;  %v416_v11 = vld [vmem:[%s869_s2 + $0x18] sm:$0xff] (!%p182_p3) }
   0x7   : > { %185 = sbr.rel (%p182_p3) target bundleno = 329 (0x149), region = 36  ;;  %647 = vmatprep.mubr.msk.bf16.mxu0 (!%p182_p3), %vm264_vm0, %v686_v0  ;;  %651 = vmatprep.mubr.msk.bf16.mxu1 (!%p182_p3), %vm264_vm0, %v688_v1  ;;  %v415_v3 = vld [vmem:[%s869_s2 + $0x10] sm:$0xff] (!%p182_p3)  ;;  %v413_v4 = vld [vmem:[%s869_s2] sm:$0xff] (!%p182_p3)  ;;  %v414_v12 = vld [vmem:[%s869_s2 + $0x8] sm:$0xff] (!%p182_p3)  ;;  %vm342_vm1 = vcmask (!%p182_p3), 64512  }
   0x8   : > { %685 = vset.pattern.permute.xlu1 (!%p182_p3), %v716_v2  ;;  %684 = vset.pattern.permute.xlu0 (!%p182_p3), %v716_v2  ;;  %v687_v13 = vld [vmem:[%s868_s1 + $0x8] sm:$0xff] (!%p182_p3)   ;;  %v689_v14 = vld [vmem:[%s868_s1 + $0x18] sm:$0xff] (!%p182_p3)   ;;  %v417_v16 = vld [vmem:[%s869_s2 + $0x20] sm:$0xff] (!%p182_p3) }
   0x9   : > { %433 = vperm.xlu1 (!%p182_p3), %685, %v415_v3   ;;  %423 = vperm.xlu0 (!%p182_p3), %684, %v413_v4   ;;  %v418_v15 = vld [vmem:[%s869_s2 + $0x28] sm:$0xff] (!%p182_p3)  ;;  %v420_v17 = vld [vmem:[%s869_s2 + $0x38] sm:$0xff] (!%p182_p3)  ;;  %v419_v18 = vld [vmem:[%s869_s2 + $0x30] sm:$0xff] (!%p182_p3) }
   0xa   : > { %v470_v19 = vld [vmem:[%s870_s3 + $0x8] sm:$0xff] (!%p182_p3)  ;;  %v469_v20 = vld [vmem:[%s870_s3] sm:$0xff] (!%p182_p3)  ;;  %v472_v21 = vld [vmem:[%s870_s3 + $0x18] sm:$0xff] (!%p182_p3) }
   0xb   : > { %v471_v22 = vld [vmem:[%s870_s3 + $0x10] sm:$0xff] (!%p182_p3)  ;;  %v474_v23 = vld [vmem:[%s870_s3 + $0x28] sm:$0xff] (!%p182_p3)  ;;  %v473_v24 = vld [vmem:[%s870_s3 + $0x20] sm:$0xff] (!%p182_p3) }
   0xc   : > { %v476_v25 = vld [vmem:[%s870_s3 + $0x38] sm:$0xff] (!%p182_p3)  ;;  %v475_v26 = vld [vmem:[%s870_s3 + $0x30] sm:$0xff] (!%p182_p3) }
   0xd   : > { %438 = vperm.xlu1 (!%p182_p3), %685, %v416_v11   ;;  %428 = vperm.xlu0 (!%p182_p3), %684, %v414_v12  }
   0xe   : > { %s877_s15 = smov (!%p213_p4, %s706_s15), 1 }
   0xf   : > { %s635_s23 = sshll.u32 %s877_s15, 5  ;;  %s636_s19 = sshll.u32 %s877_s15, 6 }
  0x10   : > { %s220_s30 = scalar_lea.vmem %s867_s0, %s635_s23  ;;  %s228_s22 = scalar_lea.vmem %s871_s4, %s636_s19 }
  0x11   : > { %v230_v5 = vld [vmem:[%s220_s30] sm:$0xff]  ;;  %v231_v6 = vld [vmem:[%s220_s30 + $0x8] sm:$0xff]  ;;  %v232_v7 = vld [vmem:[%s220_s30 + $0x10] sm:$0xff]  ;;  %448 = vperm.xlu1 %685, %v418_v15   ;;  %443 = vperm.xlu0 %684, %v417_v16  }
  0x12   : > { %v234_v8 = vpack.c.bf16 %v231_v6, %v230_v5  ;;  %v233_v9 = vld [vmem:[%s220_s30 + $0x18] sm:$0xff] }
  0x13   : > { %v235_v10 = vpack.c.bf16 %v233_v9, %v232_v7 }
  0x14   : > { %643 = vmatprep.subr.bf16.mxu0 %v234_v8  ;;  %655 = vmatprep.subr.bf16.mxu1 %v234_v8 }
  0x15   : > { %644 = vmatpush3.bf16.msra.mxu0 %v234_v8  ;;  %657 = vmatpush3.bf16.msra.mxu1 %v234_v8 }
  0x16   : > { %645 = vmatprep.subr.bf16.mxu0 %v235_v10  ;;  %656 = vmatprep.subr.bf16.mxu1 %v235_v10 }
  0x17   : > { %458 = vperm.xlu1 %685, %v420_v17   ;;  %453 = vperm.xlu0 %684, %v419_v18  }
  0x19   : > { %646 = vmatpush3.bf16.msra.mxu0 %v235_v10  ;;  %658 = vmatpush3.bf16.msra.mxu1 %v235_v10 }
  0x1b   : > { %484 = vperm.xlu1 %685, %v470_v19   ;;  %479 = vperm.xlu0 %684, %v469_v20  }
  0x1c   : > { %648 = vmatmul.mubr.msk.bf16.vlgmr.msra.gmra.mrb[0].mxu0 %vm264_vm0, %v687_v13  ;;  %652 = vmatmul.mubr.msk.bf16.vlgmr.msra.gmra.mrb[0].mxu1 %vm264_vm0, %v689_v14 }
  0x1f   : > { %494 = vperm.xlu1 %685, %v472_v21   ;;  %489 = vperm.xlu0 %684, %v471_v22  }
  0x23   : > { %504 = vperm.xlu1 %685, %v474_v23   ;;  %499 = vperm.xlu0 %684, %v473_v24  }
  0x27   : > { %514 = vperm.xlu1 %685, %v476_v25   ;;  %509 = vperm.xlu0 %684, %v475_v26  }
  0x88   : > { %v434_v12 = vpop.permute.xlu1 %433  ;;  %v424_v14 = vpop.permute.xlu0 %423 }
  0x8c   : > { %v439_v23 = vpop.permute.xlu1 %438  ;;  %v429_v24 = vpop.permute.xlu0 %428 }
  0xef   : > { %v649_v27 = vpop.f32.mrb[0].mxu0  ;;  %v653_v28 = vpop.f32.mrb[0].mxu1 }
  0xf0   : > { %v311_v29 = vpop.f32.mrb[1].mxu0  ;;  %v327_v30 = vpop.f32.mrb[1].mxu1  ;;  %v346_v38 = vsel %vm342_vm1, %v649_v27, 0.0  ;;  %v354_v46 = vsel %vm342_vm1, %v653_v28, 0.0 }
  0xf1   : > { %v650_v31 = vpop.f32.mrb[2].mxu0  ;;  %v654_v32 = vpop.f32.mrb[2].mxu1  ;;  %v343_v35 = vsel %vm342_vm1, %v311_v29, 0.0  ;;  %v350_v41 = vsel %vm342_vm1, %v327_v30, 0.0 }
  0xf2   : > { %v314_v33 = vpop.f32.mrb[3].mxu0  ;;  %v330_v34 = vpop.f32.mrb[3].mxu1  ;;  %v348_v40 = vsel %vm342_vm1, %v650_v31, 0.0  ;;  %v356_v48 = vsel %vm342_vm1, %v654_v32, 0.0 }
  0xf3   : > { %v344_v36 = vsel %vm342_vm1, %v314_v33, 0.0  ;;  %v352_v44 = vsel %vm342_vm1, %v330_v34, 0.0 }
  0xf4   : > { %v345_v37 = vadd.f32 %v344_v36, %v343_v35 }
  0xf6   : > { %v347_v39 = vadd.f32 %v346_v38, %v345_v37 }
  0xf8   : > { %v349_v42 = vadd.f32 %v348_v40, %v347_v39 }
  0xfa   : > { %v351_v43 = vadd.f32 %v350_v41, %v349_v42 }
  0xfc   : > { %v353_v45 = vadd.f32 %v352_v44, %v351_v43 }
  0xfe   : > { %v355_v47 = vadd.f32 %v354_v46, %v353_v45 }
 0x100   : > { %v357_v49 = vadd.f32 %v356_v48, %v355_v47 }
 0x102   : > { %v358_v50 = vrot.slane %v357_v49, 4 }
 0x104   : > { %v359_v51 = vadd.f32 %v358_v50, %v357_v49 }
 0x106   : > { %v360_v52 = vrot.slane %v359_v51, 2 }
 0x108   : > { %v361_v53 = vadd.f32 %v360_v52, %v359_v51 }
 0x10a   : > { %v362_v54 = vrot.slane %v361_v53, 1 }
 0x10c   : > { %v363_v55 = vadd.f32 %v362_v54, %v361_v53 }
 0x10e   : > { %v364_v56 = vmul.f32 0.015625, %v363_v55 }
 0x110   : > { %v368_v57 = vsub.f32 %v650_v31, %v364_v56  ;;  %v370_v58 = vsub.f32 %v330_v34, %v364_v56  ;;  %v372_v59 = vsub.f32 %v654_v32, %v364_v56  ;;  %v365_v60 = vsub.f32 %v311_v29, %v364_v56  ;;  %v449_v29 = vpop.permute.xlu1 %448 }
 0x111   : > { %v366_v61 = vsub.f32 %v314_v33, %v364_v56  ;;  %v367_v62 = vsub.f32 %v649_v27, %v364_v56  ;;  %v369_v63 = vsub.f32 %v327_v30, %v364_v56  ;;  %v371_v0 = vsub.f32 %v653_v28, %v364_v56  ;;  %v444_v30 = vpop.permute.xlu0 %443 }
 0x112   : > { %v373_v1 = vmul.f32 %v365_v60, %v365_v60  ;;  %v376_v5 = vmul.f32 %v368_v57, %v368_v57  ;;  %v378_v11 = vmul.f32 %v370_v58, %v370_v58  ;;  %v380_v20 = vmul.f32 %v372_v59, %v372_v59 }
 0x113   : > { %v374_v2 = vmul.f32 %v366_v61, %v366_v61  ;;  %v375_v3 = vmul.f32 %v367_v62, %v367_v62  ;;  %v377_v8 = vmul.f32 %v369_v63, %v369_v63  ;;  %v379_v16 = vmul.f32 %v371_v0, %v371_v0 }
 0x114   : > { %v381_v4 = vsel %vm342_vm1, %v373_v1, 0.0  ;;  %v386_v13 = vsel %vm342_vm1, %v376_v5, 0.0  ;;  %v390_v19 = vsel %vm342_vm1, %v378_v11, 0.0  ;;  %v394_v26 = vsel %vm342_vm1, %v380_v20, 0.0  ;;  %v459_v34 = vpop.permute.xlu1 %458 }
 0x115   : > { %v382_v6 = vsel %vm342_vm1, %v374_v2, 0.0  ;;  %v384_v9 = vsel %vm342_vm1, %v375_v3, 0.0  ;;  %v388_v17 = vsel %vm342_vm1, %v377_v8, 0.0  ;;  %v392_v22 = vsel %vm342_vm1, %v379_v16, 0.0  ;;  %v454_v35 = vpop.permute.xlu0 %453 }
 0x116   : > { %v383_v7 = vadd.f32 %v382_v6, %v381_v4 }
 0x118   : > { %v385_v10 = vadd.f32 %v384_v9, %v383_v7  ;;  %v485_v39 = vpop.permute.xlu1 %484 }
 0x119   : > { %v480_v40 = vpop.permute.xlu0 %479 }
 0x11a   : > { %v387_v15 = vadd.f32 %v386_v13, %v385_v10 }
 0x11c   : > { %v389_v18 = vadd.f32 %v388_v17, %v387_v15  ;;  %v495_v42 = vpop.permute.xlu1 %494 }
 0x11d   : > { %v490_v43 = vpop.permute.xlu0 %489 }
 0x11e   : > { %v391_v21 = vadd.f32 %v390_v19, %v389_v18 }
 0x120   : > { %v393_v25 = vadd.f32 %v392_v22, %v391_v21  ;;  %v505_v44 = vpop.permute.xlu1 %504 }
 0x121   : > { %v500_v45 = vpop.permute.xlu0 %499 }
 0x122   : > { %v395_v27 = vadd.f32 %v394_v26, %v393_v25 }
 0x124   : > { %v396_v28 = vrot.slane %v395_v27, 4 }
 0x126   : > { %v397_v31 = vadd.f32 %v396_v28, %v395_v27 }
 0x128   : > { %v398_v32 = vrot.slane %v397_v31, 2 }
 0x12a   : > { %v399_v33 = vadd.f32 %v398_v32, %v397_v31 }
 0x12c   : > { %v400_v36 = vrot.slane %v399_v33, 1 }
 0x12e   : > { %v401_v37 = vadd.f32 %v400_v36, %v399_v33 }
 0x130   : > { %v402_v38 = vmul.f32 0.015625, %v401_v37 }
 0x132   : > { %v403_v41 = vadd.f32 1e-05, %v402_v38 }
 0x134   : > { %690 = vrsqrt.f32 %v403_v41 }
 0x13e   : > { %v691_v46 = vpop.eup %690 }
 0x13f   : > { %v407_v47 = vmul.f32 %v691_v46, %v367_v62  ;;  %v405_v48 = vmul.f32 %v691_v46, %v365_v60  ;;  %v408_v49 = vmul.f32 %v691_v46, %v368_v57  ;;  %v406_v50 = vmul.f32 %v691_v46, %v366_v61 }
 0x140   : > { %v410_v51 = vmul.f32 %v691_v46, %v370_v58  ;;  %v409_v52 = vmul.f32 %v691_v46, %v369_v63  ;;  %v412_v53 = vmul.f32 %v691_v46, %v372_v59  ;;  %v411_v54 = vmul.f32 %v691_v46, %v371_v0  ;;  %v515_v58 = vpop.permute.xlu1 %514  ;;  %v510_v63 = vpop.permute.xlu0 %509 }
 0x141   : > { %v463_v55 = vmul.f32 %v434_v12, %v407_v47  ;;  %v461_v56 = vmul.f32 %v424_v14, %v405_v48  ;;  %v464_v1 = vmul.f32 %v439_v23, %v408_v49  ;;  %v462_v2 = vmul.f32 %v429_v24, %v406_v50 }
 0x142   : > { %v466_v3 = vmul.f32 %v449_v29, %v410_v51  ;;  %v465_v4 = vmul.f32 %v444_v30, %v409_v52  ;;  %v468_v5 = vmul.f32 %v459_v34, %v412_v53  ;;  %v467_v6 = vmul.f32 %v454_v35, %v411_v54 }
 0x143   : > { %v518_v62 = vadd.f32 %v485_v39, %v462_v2  ;;  %v517_v60 = vadd.f32 %v480_v40, %v461_v56  ;;  %v520_v57 = vadd.f32 %v495_v42, %v464_v1  ;;  %v519_v61 = vadd.f32 %v490_v43, %v463_v55 }
 0x144   : > { %v522_v59 = vadd.f32 %v505_v44, %v466_v3  ;;  %v521_v0 = vadd.f32 %v500_v45, %v465_v4  ;;  %v524_v7 = vadd.f32 %v515_v58, %v468_v5  ;;  %v523_v8 = vadd.f32 %v510_v63, %v467_v6 }
 0x145   : > { %526 = vst.msk [vmem:[%s228_s22 + $0x8] sm:$0xff] %vm342_vm1, %v518_v62  ;;  %525 = vst.msk [vmem:[%s228_s22] sm:$0xff] %vm342_vm1, %v517_v60 }
 0x146   : > { %528 = vst.msk [vmem:[%s228_s22 + $0x18] sm:$0xff] %vm342_vm1, %v520_v57  ;;  %527 = vst.msk [vmem:[%s228_s22 + $0x10] sm:$0xff] %vm342_vm1, %v519_v61 }
 0x147   : > { %530 = vst.msk [vmem:[%s228_s22 + $0x28] sm:$0xff] %vm342_vm1, %v522_v59  ;;  %529 = vst.msk [vmem:[%s228_s22 + $0x20] sm:$0xff] %vm342_vm1, %v521_v0 }
 0x148   : > { %532 = vst.msk [vmem:[%s228_s22 + $0x38] sm:$0xff] %vm342_vm1, %v524_v7  ;;  %531 = vst.msk [vmem:[%s228_s22 + $0x30] sm:$0xff] %vm342_vm1, %v523_v8 }
 0x149 PF: > { %s14_s17 = sadd.s32 1, %s714_s17   ;;  %s872_s15 = smov %s710_s16 }
 0x14a   : > { %p11_p5 = scmp.ge.s32.totalorder %s14_s17, 4   ;;  %s873_s16 = smov %s875_s18 }
 0x14c   :  { %13 = sbr.rel (!%p11_p5) target bundleno = 2 (0x2), region = 66 }

</bundles_post_ra>
